<compile_context>
chip_gen: v5e
topology: v5e:2x2
jax: 0.10.0
libtpu: 0.0.40
codegen_flags: <defaults>
</compile_context>

<pallas_src>
import functools

import jax
import jax.numpy as jnp
from jax.experimental import pallas as pl
from jax.experimental.pallas import tpu as pltpu

V_TH = 1.0        # IFNode default v_threshold
LANE = 128
VMEM_LIMIT = 32 * 1024 * 1024   # explicit, safe on v5e/v6e/v7x


def _round_up(x, m):
    return (x + m - 1) // m * m


def _pick_q_tile(Q, max_tile=512):
    """Q is a multiple of 128.  Largest lane-aligned tile <= max_tile, preferring >=2
    tiles so the parallel axis can shard across 2 TensorCores (v7x)."""
    tq = min(Q, max_tile)
    tq -= tq % LANE
    tq = max(tq, LANE)
    if Q // tq < 2 and Q >= 2 * LANE:
        tq = _round_up(Q // 2, LANE)
    return tq


# ----------------------- fused 1x1 conv + BN + IF kernels -----------------------

def _conv1x1_bn_if_kernel(x_ref, w_ref, s_ref, b_ref, m_ref, o_ref, v_ref):
    """spike = IF_step(BN(W @ x)) * mask   (mask keeps conv2's zero padding exact)."""
    t = pl.program_id(1)

    @pl.when(t == 0)
    def _():
        v_ref[...] = jnp.zeros_like(v_ref)

    y = jnp.dot(w_ref[...], x_ref[0], preferred_element_type=jnp.float32)
    y = y * s_ref[...] + b_ref[...]
    v = v_ref[...] + y
    spike = (v >= V_TH).astype(jnp.float32)
    v_ref[...] = v * (1.0 - spike)                     # hard reset, v_reset = 0
    o_ref[0] = (spike * m_ref[...]).astype(o_ref.dtype)


def _conv1x1_bn_if_res_kernel(x_ref, r_ref, w_ref, s_ref, b_ref, o_ref, v_ref):
    """spike = IF_step(BN(W @ x) + identity)  (residual fused into the input current)."""
    t = pl.program_id(1)

    @pl.when(t == 0)
    def _():
        v_ref[...] = jnp.zeros_like(v_ref)

    y = jnp.dot(w_ref[...], x_ref[0], preferred_element_type=jnp.float32)
    y = y * s_ref[...] + b_ref[...] + r_ref[0].astype(jnp.float32)
    v = v_ref[...] + y
    spike = (v >= V_TH).astype(jnp.float32)
    v_ref[...] = v * (1.0 - spike)
    o_ref[0] = spike.astype(o_ref.dtype)


def conv1x1_bn_if(x, w, scale, bias, mask=None, residual=None):
    """x: [T, K, Q] bf16, w: [Cout, K] bf16, scale/bias: [Cout, 1] f32,
       mask: [1, Q] f32 (required if residual is None), residual: [T, Cout, Q] bf16.
       Returns spikes [T, Cout, Q] bf16."""
    T, K, Q = x.shape
    Cout = w.shape[0]
    tq = _pick_q_tile(Q)
    grid = (pl.cdiv(Q, tq), T)     # T innermost -> membrane state carried over time

    x_spec = pl.BlockSpec((1, K, tq), lambda m, t: (t, 0, m))
    o_spec = pl.BlockSpec((1, Cout, tq), lambda m, t: (t, 0, m))
    r_spec = pl.BlockSpec((1, Cout, tq), lambda m, t: (t, 0, m))
    w_spec = pl.BlockSpec((Cout, K), lambda m, t: (0, 0))
    sb_spec = pl.BlockSpec((Cout, 1), lambda m, t: (0, 0))
    m_spec = pl.BlockSpec((1, tq), lambda m, t: (0, m))

    if residual is None:
        assert mask is not None
        kernel = _conv1x1_bn_if_kernel
        in_specs = [x_spec, w_spec, sb_spec, sb_spec, m_spec]
        args = (x, w, scale, bias, mask)
    else:
        kernel = _conv1x1_bn_if_res_kernel
        in_specs = [x_spec, r_spec, w_spec, sb_spec, sb_spec]
        args = (x, residual, w, scale, bias)

    return pl.pallas_call(
        kernel,
        out_shape=jax.ShapeDtypeStruct((T, Cout, Q), jnp.bfloat16),
        grid=grid,
        in_specs=in_specs,
        out_specs=o_spec,
        scratch_shapes=[pltpu.VMEM((Cout, tq), jnp.float32)],   # membrane potential v
        compiler_params=pltpu.CompilerParams(
            dimension_semantics=("parallel", "arbitrary"),
            vmem_limit_bytes=VMEM_LIMIT),
    )(*args)


# ----------------------- fused 3x3 conv + BN + IF kernel ------------------------

def _conv3x3_bn_if_kernel(x_ref, w_ref, s_ref, b_ref, o_ref, v_ref, *, shifts):
    """9-tap conv as lane-shifted accumulating matmuls over the padded-flat pixel axis.
    Halo columns of x are zero (masked upstream), so the wrap-around columns of the
    shifts only ever land in halo/tail positions, which are never read downstream."""
    t = pl.program_id(0)

    @pl.when(t == 0)
    def _():
        v_ref[...] = jnp.zeros_like(v_ref)

    xv = x_ref[0]                                  # [C, Q] bf16 spikes
    Co = o_ref.shape[1]
    Q = xv.shape[1]
    acc = jnp.zeros((Co, Q), jnp.float32)
    for k, s in enumerate(shifts):                 # statically unrolled, 9 taps
        r = s % Q
        xs = xv if r == 0 else jnp.concatenate([xv[:, r:], xv[:, :r]], axis=1)
        acc = acc + jnp.dot(w_ref[k], xs, preferred_element_type=jnp.float32)
    y = acc * s_ref[...] + b_ref[...]
    v = v_ref[...] + y
    spike = (v >= V_TH).astype(jnp.float32)
    v_ref[...] = v * (1.0 - spike)
    o_ref[0] = spike.astype(o_ref.dtype)


def conv3x3_bn_if(x, w, scale, bias, *, Wp):
    """x: [T, C, Q] bf16 spikes on the padded-flat pixel grid (zero halo columns),
       w: [9, Co, C] bf16 (tap-major), scale/bias: [Co, 1] f32 -> spikes [T, Co, Q]."""
    T, C, Q = x.shape
    Co = w.shape[1]
    shifts = tuple((kh - 1) * Wp + (kw - 1) for kh in range(3) for kw in range(3))
    kernel = functools.partial(_conv3x3_bn_if_kernel, shifts=shifts)
    # TODO(synk): for production N*H*W, halo-tile the pixel axis with manual DMA; here
    # the whole padded pixel axis is one block per time step.
    return pl.pallas_call(
        kernel,
        out_shape=jax.ShapeDtypeStruct((T, Co, Q), jnp.bfloat16),
        grid=(T,),
        in_specs=[
            pl.BlockSpec((1, C, Q), lambda t: (t, 0, 0)),
            pl.BlockSpec((9, Co, C), lambda t: (0, 0, 0)),
            pl.BlockSpec((Co, 1), lambda t: (0, 0)),
            pl.BlockSpec((Co, 1), lambda t: (0, 0)),
        ],
        out_specs=pl.BlockSpec((1, Co, Q), lambda t: (t, 0, 0)),
        scratch_shapes=[pltpu.VMEM((Co, Q), jnp.float32)],      # membrane potential v
        compiler_params=pltpu.CompilerParams(
            dimension_semantics=("arbitrary",),
            vmem_limit_bytes=VMEM_LIMIT),
    )(x, w, scale, bias)


# --------------------------------- JAX glue -------------------------------------

def bn_fold(gamma, beta, mean, var, eps=1e-5):
    scale = gamma / jnp.sqrt(var + eps)
    return scale, beta - mean * scale


def make_params(in_channels, mid, key):
    k = jax.random.split(key, 6)
    exp = 4
    # PyTorch conv weights: [Cout, Cin, kh, kw]
    w1_t = jax.random.normal(k[0], (mid, in_channels, 1, 1), jnp.float32) / jnp.sqrt(in_channels)
    w2_t = jax.random.normal(k[1], (mid, mid, 3, 3), jnp.float32) / jnp.sqrt(9.0 * mid)
    w3_t = jax.random.normal(k[2], (mid * exp, mid, 1, 1), jnp.float32) / jnp.sqrt(mid)

    def bn(kk, c):
        ks = jax.random.split(kk, 4)
        gamma = 1.0 + 0.1 * jax.random.normal(ks[0], (c,), jnp.float32)
        beta = 0.05 * jax.random.normal(ks[1], (c,), jnp.float32)
        mean = 0.1 * jax.random.normal(ks[2], (c,), jnp.float32)
        var = jax.random.uniform(ks[3], (c,), jnp.float32, 0.5, 1.5)
        return bn_fold(gamma, beta, mean, var)

    s1, b1 = bn(k[3], mid)
    s2, b2 = bn(k[4], mid)
    s3, b3 = bn(k[5], mid * exp)
    return dict(
        # output-channel-major weights, bf16 for the MXU's native path
        w1=w1_t[:, :, 0, 0].astype(jnp.bfloat16),                              # [mid, Cin]
        w2=jnp.transpose(w2_t, (2, 3, 0, 1)).reshape(9, mid, mid).astype(jnp.bfloat16),
        w3=w3_t[:, :, 0, 0].astype(jnp.bfloat16),                              # [4*mid, mid]
        s1=s1.reshape(-1, 1), b1=b1.reshape(-1, 1),
        s2=s2.reshape(-1, 1), b2=b2.reshape(-1, 1),
        s3=s3.reshape(-1, 1), b3=b3.reshape(-1, 1),
    )


def bottleneck_forward(x, params, *, stride=1):
    """x: [T, N, Cin, H, W] f32 (PyTorch layout). Returns spikes [T, N, 4*mid, H, W] f32."""
    if stride != 1:
        raise NotImplementedError("downsample=None requires stride == 1")
    T, N, Cin, H, W = x.shape
    mid = params["w1"].shape[0]
    cout = params["w3"].shape[0]
    if Cin != cout:
        raise NotImplementedError("downsample=None requires in_channels == 4*mid_channels")

    Hp, Wp = H + 2, W + 2
    Qimg = N * Hp * Wp
    Q = _round_up(Qimg, LANE)

    # channel-first, spatially zero-padded, flattened-pixel ("padded-flat") layout
    x_cf = jnp.transpose(x, (0, 2, 1, 3, 4))                        # [T, C, N, H, W]
    x_pf = jnp.pad(x_cf, ((0, 0), (0, 0), (0, 0), (1, 1), (1, 1)))  # zero halo ring
    x_pf = x_pf.reshape(T, Cin, Qimg)
    x_pf = jnp.pad(x_pf, ((0, 0), (0, 0), (0, Q - Qimg))).astype(jnp.bfloat16)

    # mask of real (non-halo, non-tail) pixel columns
    mask = jnp.pad(jnp.ones((N, H, W), jnp.float32), ((0, 0), (1, 1), (1, 1)))
    mask = jnp.pad(mask.reshape(Qimg), (0, Q - Qimg)).reshape(1, Q)

    # conv1(1x1)+BN -> IF   (spikes masked so conv2 sees exact zero padding)
    s1 = conv1x1_bn_if(x_pf, params["w1"], params["s1"], params["b1"], mask=mask)
    # conv2(3x3,pad=1)+BN -> IF   (in-kernel 9-tap shifted accumulation, no im2col)
    s2 = conv3x3_bn_if(s1, params["w2"], params["s2"], params["b2"], Wp=Wp)
    # conv3(1x1)+BN + identity -> IF
    s3 = conv1x1_bn_if(s2, params["w3"], params["s3"], params["b3"], residual=x_pf)

    out = s3[:, :, :Qimg].reshape(T, cout, N, Hp, Wp)[:, :, :, 1:1 + H, 1:1 + W]
    return jnp.transpose(out, (0, 2, 1, 3, 4)).astype(jnp.float32)


# ----------------------------------- main ---------------------------------------

if __name__ == "__main__":
    T, N, H, W = 4, 2, 8, 8
    mid = 8
    Cin = mid * 4   # residual with downsample=None requires in_channels == mid*expansion

    key = jax.random.PRNGKey(0)
    kx, kp = jax.random.split(key)
    params = make_params(Cin, mid, kp)

    x = jax.random.normal(kx, (T, N, Cin, H, W), jnp.float32)   # PyTorch layout

    out = jax.jit(bottleneck_forward)(x, params)
    out = jax.block_until_ready(out)

    assert out.shape == (T, N, mid * 4, H, W)
    assert bool(jnp.isfinite(out).all())
    assert bool(jnp.all((out == 0.0) | (out == 1.0)))   # IFNode emits binary spikes
    print("KERNEL_OK")
</pallas_src>

<mosaic_0001>
module attributes {stable_mosaic.version = 11 : i64} {
  func.func @_conv1x1_bn_if_kernel(%arg0: i32, %arg1: i32, %arg2: memref<1x32x128xbf16, #tpu.memory_space<vmem>>, %arg3: memref<8x32xbf16, #tpu.memory_space<vmem>>, %arg4: memref<8x1xf32, #tpu.memory_space<vmem>>, %arg5: memref<8x1xf32, #tpu.memory_space<vmem>>, %arg6: memref<1x128xf32, #tpu.memory_space<vmem>>, %arg7: memref<1x8x128xbf16, #tpu.memory_space<vmem>>, %arg8: memref<8x128xf32, #tpu.memory_space<vmem>>) attributes {dimension_semantics = [#tpu.dimension_semantics<parallel>, #tpu.dimension_semantics<arbitrary>], iteration_bounds = array<i64: 2, 4>, scalar_prefetch = 0 : i64, scratch_operands = 1 : i64, tpu.core_type = #tpu.core_type<tc>, window_params = [{transform_indices = @transform_0, window_bounds = array<i64: 1, 32, 128>}, {pipeline_mode = #tpu.pipeline_mode<synchronous>, transform_indices = @transform_1, window_bounds = array<i64: 8, 32>}, {pipeline_mode = #tpu.pipeline_mode<synchronous>, transform_indices = @transform_2, window_bounds = array<i64: 8, 1>}, {pipeline_mode = #tpu.pipeline_mode<synchronous>, transform_indices = @transform_3, window_bounds = array<i64: 8, 1>}, {transform_indices = @transform_4, window_bounds = array<i64: 1, 128>}, {transform_indices = @transform_5, window_bounds = array<i64: 1, 8, 128>}]} {
    %c0_i32 = arith.constant 0 : i32
    %0 = arith.cmpi eq, %arg1, %c0_i32 : i32
    %1 = arith.extui %0 : i1 to i32
    %c0_i32_0 = arith.constant 0 : i32
    %2 = arith.cmpi ne, %1, %c0_i32_0 : i32
    scf.if %2 {
      %cst_20 = arith.constant 0.000000e+00 : f32
      %30 = vector.broadcast %cst_20 : f32 to vector<8x128xf32>
      %c0_21 = arith.constant 0 : index
      %c0_22 = arith.constant 0 : index
      %31 = vector.load %arg8[%c0_21, %c0_22] : memref<8x128xf32, #tpu.memory_space<vmem>>, vector<8x128xf32>
      tpu.vector_store %arg8[%c0_21, %c0_22], %30 {strides = array<i32>} : memref<8x128xf32, #tpu.memory_space<vmem>>, vector<8x128xf32>,
    } else {
    }
    %c0 = arith.constant 0 : index
    %c0_1 = arith.constant 0 : index
    %3 = vector.load %arg3[%c0, %c0_1] : memref<8x32xbf16, #tpu.memory_space<vmem>>, vector<8x32xbf16>
    %c0_2 = arith.constant 0 : index
    %c0_3 = arith.constant 0 : index
    %c0_4 = arith.constant 0 : index
    %4 = vector.load %arg2[%c0_2, %c0_3, %c0_4] : memref<1x32x128xbf16, #tpu.memory_space<vmem>>, vector<1x32x128xbf16>
    %5 = vector.shape_cast %4 : vector<1x32x128xbf16> to vector<32x128xbf16>
    %cst = arith.constant dense<0.000000e+00> : vector<8x128xf32>
    %6 = tpu.matmul %3, %5, %cst {dimension_numbers = #tpu.dot_dimension_numbers<[1], [0], [0], [1], [0, 0, 1, 1], [], []>} : vector<8x32xbf16>, vector<32x128xbf16>, vector<8x128xf32> -> vector<8x128xf32>
    %c0_5 = arith.constant 0 : index
    %c0_6 = arith.constant 0 : index
    %7 = vector.load %arg4[%c0_5, %c0_6] : memref<8x1xf32, #tpu.memory_space<vmem>>, vector<8x1xf32>
    %8 = vector.broadcast %7 : vector<8x1xf32> to vector<8x128xf32>
    %9 = arith.mulf %6, %8 : vector<8x128xf32>
    %c0_7 = arith.constant 0 : index
    %c0_8 = arith.constant 0 : index
    %10 = vector.load %arg5[%c0_7, %c0_8] : memref<8x1xf32, #tpu.memory_space<vmem>>, vector<8x1xf32>
    %11 = vector.broadcast %10 : vector<8x1xf32> to vector<8x128xf32>
    %12 = arith.addf %9, %11 : vector<8x128xf32>
    %c0_9 = arith.constant 0 : index
    %c0_10 = arith.constant 0 : index
    %13 = vector.load %arg8[%c0_9, %c0_10] : memref<8x128xf32, #tpu.memory_space<vmem>>, vector<8x128xf32>
    %14 = arith.addf %13, %12 : vector<8x128xf32>
    %cst_11 = arith.constant 1.000000e+00 : f32
    %15 = vector.broadcast %cst_11 : f32 to vector<8x128xf32>
    %16 = arith.cmpf oge, %14, %15 : vector<8x128xf32>
    %17 = arith.extui %16 : vector<8x128xi1> to vector<8x128xi32>
    %18 = arith.sitofp %17 : vector<8x128xi32> to vector<8x128xf32>
    %cst_12 = arith.constant 1.000000e+00 : f32
    %19 = vector.broadcast %cst_12 : f32 to vector<8x128xf32>
    %20 = arith.subf %19, %18 : vector<8x128xf32>
    %21 = arith.mulf %14, %20 : vector<8x128xf32>
    %c0_13 = arith.constant 0 : index
    %c0_14 = arith.constant 0 : index
    %22 = vector.load %arg8[%c0_13, %c0_14] : memref<8x128xf32, #tpu.memory_space<vmem>>, vector<8x128xf32>
    tpu.vector_store %arg8[%c0_13, %c0_14], %21 {strides = array<i32>} : memref<8x128xf32, #tpu.memory_space<vmem>>, vector<8x128xf32>,
    %c0_15 = arith.constant 0 : index
    %c0_16 = arith.constant 0 : index
    %23 = vector.load %arg6[%c0_15, %c0_16] : memref<1x128xf32, #tpu.memory_space<vmem>>, vector<1x128xf32>
    %24 = vector.broadcast %23 : vector<1x128xf32> to vector<8x128xf32>
    %25 = arith.mulf %18, %24 : vector<8x128xf32>
    %26 = arith.truncf %25 : vector<8x128xf32> to vector<8x128xbf16>
    %c0_17 = arith.constant 0 : index
    %c0_18 = arith.constant 0 : index
    %c0_19 = arith.constant 0 : index
    %27 = vector.load %arg7[%c0_17, %c0_18, %c0_19] : memref<1x8x128xbf16, #tpu.memory_space<vmem>>, vector<1x8x128xbf16>
    %28 = vector.shape_cast %27 : vector<1x8x128xbf16> to vector<8x128xbf16>
    %29 = vector.shape_cast %26 : vector<8x128xbf16> to vector<1x8x128xbf16>
    tpu.vector_store %arg7[%c0_17, %c0_18, %c0_19], %29 {strides = array<i32>} : memref<1x8x128xbf16, #tpu.memory_space<vmem>>, vector<1x8x128xbf16>,
    return
  }
  func.func @transform_0(%arg0: i32, %arg1: i32) -> (i32, i32, i32) {
    %c0_i32 = arith.constant 0 : i32
    %c0_i32_0 = arith.constant 0 : i32
    return %arg1, %c0_i32, %arg0 : i32, i32, i32
  }
  func.func @transform_1(%arg0: i32, %arg1: i32) -> (i32, i32) {
    %c0_i32 = arith.constant 0 : i32
    %c0_i32_0 = arith.constant 0 : i32
    %c0_i32_1 = arith.constant 0 : i32
    return %c0_i32, %c0_i32_0 : i32, i32
  }
  func.func @transform_2(%arg0: i32, %arg1: i32) -> (i32, i32) {
    %c0_i32 = arith.constant 0 : i32
    %c0_i32_0 = arith.constant 0 : i32
    %c0_i32_1 = arith.constant 0 : i32
    return %c0_i32, %c0_i32_0 : i32, i32
  }
  func.func @transform_3(%arg0: i32, %arg1: i32) -> (i32, i32) {
    %c0_i32 = arith.constant 0 : i32
    %c0_i32_0 = arith.constant 0 : i32
    %c0_i32_1 = arith.constant 0 : i32
    return %c0_i32, %c0_i32_0 : i32, i32
  }
  func.func @transform_4(%arg0: i32, %arg1: i32) -> (i32, i32) {
    %c0_i32 = arith.constant 0 : i32
    %c0_i32_0 = arith.constant 0 : i32
    return %c0_i32, %arg0 : i32, i32
  }
  func.func @transform_5(%arg0: i32, %arg1: i32) -> (i32, i32, i32) {
    %c0_i32 = arith.constant 0 : i32
    %c0_i32_0 = arith.constant 0 : i32
    return %arg1, %c0_i32, %arg0 : i32, i32, i32
  }
}

module attributes {stable_mosaic.version = 11 : i64} {
  func.func @_conv3x3_bn_if_kernel(%arg0: i32, %arg1: memref<1x8x256xbf16, #tpu.memory_space<vmem>>, %arg2: memref<9x8x8xbf16, #tpu.memory_space<vmem>>, %arg3: memref<8x1xf32, #tpu.memory_space<vmem>>, %arg4: memref<8x1xf32, #tpu.memory_space<vmem>>, %arg5: memref<1x8x256xbf16, #tpu.memory_space<vmem>>, %arg6: memref<8x256xf32, #tpu.memory_space<vmem>>) attributes {dimension_semantics = [#tpu.dimension_semantics<arbitrary>], iteration_bounds = array<i64: 4>, scalar_prefetch = 0 : i64, scratch_operands = 1 : i64, tpu.core_type = #tpu.core_type<tc>, window_params = [{transform_indices = @transform_0, window_bounds = array<i64: 1, 8, 256>}, {pipeline_mode = #tpu.pipeline_mode<synchronous>, transform_indices = @transform_1, window_bounds = array<i64: 9, 8, 8>}, {pipeline_mode = #tpu.pipeline_mode<synchronous>, transform_indices = @transform_2, window_bounds = array<i64: 8, 1>}, {pipeline_mode = #tpu.pipeline_mode<synchronous>, transform_indices = @transform_3, window_bounds = array<i64: 8, 1>}, {transform_indices = @transform_4, window_bounds = array<i64: 1, 8, 256>}]} {
    %c0_i32 = arith.constant 0 : i32
    %0 = arith.cmpi eq, %arg0, %c0_i32 : i32
    %1 = arith.extui %0 : i1 to i32
    %c0_i32_0 = arith.constant 0 : i32
    %2 = arith.cmpi ne, %1, %c0_i32_0 : i32
    scf.if %2 {
      %cst_44 = arith.constant 0.000000e+00 : f32
      %86 = vector.broadcast %cst_44 : f32 to vector<8x256xf32>
      %c0_45 = arith.constant 0 : index
      %c0_46 = arith.constant 0 : index
      %87 = vector.load %arg6[%c0_45, %c0_46] : memref<8x256xf32, #tpu.memory_space<vmem>>, vector<8x256xf32>
      tpu.vector_store %arg6[%c0_45, %c0_46], %86 {strides = array<i32>} : memref<8x256xf32, #tpu.memory_space<vmem>>, vector<8x256xf32>,
    } else {
    }
    %c0 = arith.constant 0 : index
    %c0_1 = arith.constant 0 : index
    %c0_2 = arith.constant 0 : index
    %3 = vector.load %arg1[%c0, %c0_1, %c0_2] : memref<1x8x256xbf16, #tpu.memory_space<vmem>>, vector<1x8x256xbf16>
    %4 = vector.shape_cast %3 : vector<1x8x256xbf16> to vector<8x256xbf16>
    %cst = arith.constant 0.000000e+00 : f32
    %5 = vector.broadcast %cst : f32 to vector<8x256xf32>
    %6 = vector.extract_strided_slice %4 {offsets = [0, 245], sizes = [8, 11], strides = [1, 1]} : vector<8x256xbf16> to vector<8x11xbf16>
    %7 = vector.extract_strided_slice %4 {offsets = [0, 0], sizes = [8, 245], strides = [1, 1]} : vector<8x256xbf16> to vector<8x245xbf16>
    %8 = tpu.concatenate %6, %7 in 1 : vector<8x11xbf16>, vector<8x245xbf16> -> vector<8x256xbf16>
    %c0_3 = arith.constant 0 : index
    %c0_4 = arith.constant 0 : index
    %c0_5 = arith.constant 0 : index
    %9 = vector.load %arg2[%c0_3, %c0_4, %c0_5] : memref<9x8x8xbf16, #tpu.memory_space<vmem>>, vector<1x8x8xbf16>
    %10 = vector.shape_cast %9 : vector<1x8x8xbf16> to vector<8x8xbf16>
    %cst_6 = arith.constant dense<0.000000e+00> : vector<8x256xf32>
    %11 = tpu.matmul %10, %8, %cst_6 {dimension_numbers = #tpu.dot_dimension_numbers<[1], [0], [0], [1], [0, 0, 1, 1], [], []>} : vector<8x8xbf16>, vector<8x256xbf16>, vector<8x256xf32> -> vector<8x256xf32>
    %12 = arith.addf %5, %11 : vector<8x256xf32>
    %13 = vector.extract_strided_slice %4 {offsets = [0, 246], sizes = [8, 10], strides = [1, 1]} : vector<8x256xbf16> to vector<8x10xbf16>
    %14 = vector.extract_strided_slice %4 {offsets = [0, 0], sizes = [8, 246], strides = [1, 1]} : vector<8x256xbf16> to vector<8x246xbf16>
    %15 = tpu.concatenate %13, %14 in 1 : vector<8x10xbf16>, vector<8x246xbf16> -> vector<8x256xbf16>
    %c1 = arith.constant 1 : index
    %c0_7 = arith.constant 0 : index
    %c0_8 = arith.constant 0 : index
    %16 = vector.load %arg2[%c1, %c0_7, %c0_8] : memref<9x8x8xbf16, #tpu.memory_space<vmem>>, vector<1x8x8xbf16>
    %17 = vector.shape_cast %16 : vector<1x8x8xbf16> to vector<8x8xbf16>
    %cst_9 = arith.constant dense<0.000000e+00> : vector<8x256xf32>
    %18 = tpu.matmul %17, %15, %cst_9 {dimension_numbers = #tpu.dot_dimension_numbers<[1], [0], [0], [1], [0, 0, 1, 1], [], []>} : vector<8x8xbf16>, vector<8x256xbf16>, vector<8x256xf32> -> vector<8x256xf32>
    %19 = arith.addf %12, %18 : vector<8x256xf32>
    %20 = vector.extract_strided_slice %4 {offsets = [0, 247], sizes = [8, 9], strides = [1, 1]} : vector<8x256xbf16> to vector<8x9xbf16>
    %21 = vector.extract_strided_slice %4 {offsets = [0, 0], sizes = [8, 247], strides = [1, 1]} : vector<8x256xbf16> to vector<8x247xbf16>
    %22 = tpu.concatenate %20, %21 in 1 : vector<8x9xbf16>, vector<8x247xbf16> -> vector<8x256xbf16>
    %c2 = arith.constant 2 : index
    %c0_10 = arith.constant 0 : index
    %c0_11 = arith.constant 0 : index
    %23 = vector.load %arg2[%c2, %c0_10, %c0_11] : memref<9x8x8xbf16, #tpu.memory_space<vmem>>, vector<1x8x8xbf16>
    %24 = vector.shape_cast %23 : vector<1x8x8xbf16> to vector<8x8xbf16>
    %cst_12 = arith.constant dense<0.000000e+00> : vector<8x256xf32>
    %25 = tpu.matmul %24, %22, %cst_12 {dimension_numbers = #tpu.dot_dimension_numbers<[1], [0], [0], [1], [0, 0, 1, 1], [], []>} : vector<8x8xbf16>, vector<8x256xbf16>, vector<8x256xf32> -> vector<8x256xf32>
    %26 = arith.addf %19, %25 : vector<8x256xf32>
    %27 = vector.extract_strided_slice %4 {offsets = [0, 255], sizes = [8, 1], strides = [1, 1]} : vector<8x256xbf16> to vector<8x1xbf16>
    %28 = vector.extract_strided_slice %4 {offsets = [0, 0], sizes = [8, 255], strides = [1, 1]} : vector<8x256xbf16> to vector<8x255xbf16>
    %29 = tpu.concatenate %27, %28 in 1 : vector<8x1xbf16>, vector<8x255xbf16> -> vector<8x256xbf16>
    %c3 = arith.constant 3 : index
    %c0_13 = arith.constant 0 : index
    %c0_14 = arith.constant 0 : index
    %30 = vector.load %arg2[%c3, %c0_13, %c0_14] : memref<9x8x8xbf16, #tpu.memory_space<vmem>>, vector<1x8x8xbf16>
    %31 = vector.shape_cast %30 : vector<1x8x8xbf16> to vector<8x8xbf16>
    %cst_15 = arith.constant dense<0.000000e+00> : vector<8x256xf32>
    %32 = tpu.matmul %31, %29, %cst_15 {dimension_numbers = #tpu.dot_dimension_numbers<[1], [0], [0], [1], [0, 0, 1, 1], [], []>} : vector<8x8xbf16>, vector<8x256xbf16>, vector<8x256xf32> -> vector<8x256xf32>
    %33 = arith.addf %26, %32 : vector<8x256xf32>
    %c4 = arith.constant 4 : index
    %c0_16 = arith.constant 0 : index
    %c0_17 = arith.constant 0 : index
    %34 = vector.load %arg2[%c4, %c0_16, %c0_17] : memref<9x8x8xbf16, #tpu.memory_space<vmem>>, vector<1x8x8xbf16>
    %35 = vector.shape_cast %34 : vector<1x8x8xbf16> to vector<8x8xbf16>
    %cst_18 = arith.constant dense<0.000000e+00> : vector<8x256xf32>
    %36 = tpu.matmul %35, %4, %cst_18 {dimension_numbers = #tpu.dot_dimension_numbers<[1], [0], [0], [1], [0, 0, 1, 1], [], []>} : vector<8x8xbf16>, vector<8x256xbf16>, vector<8x256xf32> -> vector<8x256xf32>
    %37 = arith.addf %33, %36 : vector<8x256xf32>
    %38 = vector.extract_strided_slice %4 {offsets = [0, 1], sizes = [8, 255], strides = [1, 1]} : vector<8x256xbf16> to vector<8x255xbf16>
    %39 = vector.extract_strided_slice %4 {offsets = [0, 0], sizes = [8, 1], strides = [1, 1]} : vector<8x256xbf16> to vector<8x1xbf16>
    %40 = tpu.concatenate %38, %39 in 1 : vector<8x255xbf16>, vector<8x1xbf16> -> vector<8x256xbf16>
    %c5 = arith.constant 5 : index
    %c0_19 = arith.constant 0 : index
    %c0_20 = arith.constant 0 : index
    %41 = vector.load %arg2[%c5, %c0_19, %c0_20] : memref<9x8x8xbf16, #tpu.memory_space<vmem>>, vector<1x8x8xbf16>
    %42 = vector.shape_cast %41 : vector<1x8x8xbf16> to vector<8x8xbf16>
    %cst_21 = arith.constant dense<0.000000e+00> : vector<8x256xf32>
    %43 = tpu.matmul %42, %40, %cst_21 {dimension_numbers = #tpu.dot_dimension_numbers<[1], [0], [0], [1], [0, 0, 1, 1], [], []>} : vector<8x8xbf16>, vector<8x256xbf16>, vector<8x256xf32> -> vector<8x256xf32>
    %44 = arith.addf %37, %43 : vector<8x256xf32>
    %45 = vector.extract_strided_slice %4 {offsets = [0, 9], sizes = [8, 247], strides = [1, 1]} : vector<8x256xbf16> to vector<8x247xbf16>
    %46 = vector.extract_strided_slice %4 {offsets = [0, 0], sizes = [8, 9], strides = [1, 1]} : vector<8x256xbf16> to vector<8x9xbf16>
    %47 = tpu.concatenate %45, %46 in 1 : vector<8x247xbf16>, vector<8x9xbf16> -> vector<8x256xbf16>
    %c6 = arith.constant 6 : index
    %c0_22 = arith.constant 0 : index
    %c0_23 = arith.constant 0 : index
    %48 = vector.load %arg2[%c6, %c0_22, %c0_23] : memref<9x8x8xbf16, #tpu.memory_space<vmem>>, vector<1x8x8xbf16>
    %49 = vector.shape_cast %48 : vector<1x8x8xbf16> to vector<8x8xbf16>
    %cst_24 = arith.constant dense<0.000000e+00> : vector<8x256xf32>
    %50 = tpu.matmul %49, %47, %cst_24 {dimension_numbers = #tpu.dot_dimension_numbers<[1], [0], [0], [1], [0, 0, 1, 1], [], []>} : vector<8x8xbf16>, vector<8x256xbf16>, vector<8x256xf32> -> vector<8x256xf32>
    %51 = arith.addf %44, %50 : vector<8x256xf32>
    %52 = vector.extract_strided_slice %4 {offsets = [0, 10], sizes = [8, 246], strides = [1, 1]} : vector<8x256xbf16> to vector<8x246xbf16>
    %53 = vector.extract_strided_slice %4 {offsets = [0, 0], sizes = [8, 10], strides = [1, 1]} : vector<8x256xbf16> to vector<8x10xbf16>
    %54 = tpu.concatenate %52, %53 in 1 : vector<8x246xbf16>, vector<8x10xbf16> -> vector<8x256xbf16>
    %c7 = arith.constant 7 : index
    %c0_25 = arith.constant 0 : index
    %c0_26 = arith.constant 0 : index
    %55 = vector.load %arg2[%c7, %c0_25, %c0_26] : memref<9x8x8xbf16, #tpu.memory_space<vmem>>, vector<1x8x8xbf16>
    %56 = vector.shape_cast %55 : vector<1x8x8xbf16> to vector<8x8xbf16>
    %cst_27 = arith.constant dense<0.000000e+00> : vector<8x256xf32>
    %57 = tpu.matmul %56, %54, %cst_27 {dimension_numbers = #tpu.dot_dimension_numbers<[1], [0], [0], [1], [0, 0, 1, 1], [], []>} : vector<8x8xbf16>, vector<8x256xbf16>, vector<8x256xf32> -> vector<8x256xf32>
    %58 = arith.addf %51, %57 : vector<8x256xf32>
    %59 = vector.extract_strided_slice %4 {offsets = [0, 11], sizes = [8, 245], strides = [1, 1]} : vector<8x256xbf16> to vector<8x245xbf16>
    %60 = vector.extract_strided_slice %4 {offsets = [0, 0], sizes = [8, 11], strides = [1, 1]} : vector<8x256xbf16> to vector<8x11xbf16>
    %61 = tpu.concatenate %59, %60 in 1 : vector<8x245xbf16>, vector<8x11xbf16> -> vector<8x256xbf16>
    %c8 = arith.constant 8 : index
    %c0_28 = arith.constant 0 : index
    %c0_29 = arith.constant 0 : index
    %62 = vector.load %arg2[%c8, %c0_28, %c0_29] : memref<9x8x8xbf16, #tpu.memory_space<vmem>>, vector<1x8x8xbf16>
    %63 = vector.shape_cast %62 : vector<1x8x8xbf16> to vector<8x8xbf16>
    %cst_30 = arith.constant dense<0.000000e+00> : vector<8x256xf32>
    %64 = tpu.matmul %63, %61, %cst_30 {dimension_numbers = #tpu.dot_dimension_numbers<[1], [0], [0], [1], [0, 0, 1, 1], [], []>} : vector<8x8xbf16>, vector<8x256xbf16>, vector<8x256xf32> -> vector<8x256xf32>
    %65 = arith.addf %58, %64 : vector<8x256xf32>
    %c0_31 = arith.constant 0 : index
    %c0_32 = arith.constant 0 : index
    %66 = vector.load %arg3[%c0_31, %c0_32] : memref<8x1xf32, #tpu.memory_space<vmem>>, vector<8x1xf32>
    %67 = vector.broadcast %66 : vector<8x1xf32> to vector<8x256xf32>
    %68 = arith.mulf %65, %67 : vector<8x256xf32>
    %c0_33 = arith.constant 0 : index
    %c0_34 = arith.constant 0 : index
    %69 = vector.load %arg4[%c0_33, %c0_34] : memref<8x1xf32, #tpu.memory_space<vmem>>, vector<8x1xf32>
    %70 = vector.broadcast %69 : vector<8x1xf32> to vector<8x256xf32>
    %71 = arith.addf %68, %70 : vector<8x256xf32>
    %c0_35 = arith.constant 0 : index
    %c0_36 = arith.constant 0 : index
    %72 = vector.load %arg6[%c0_35, %c0_36] : memref<8x256xf32, #tpu.memory_space<vmem>>, vector<8x256xf32>
    %73 = arith.addf %72, %71 : vector<8x256xf32>
    %cst_37 = arith.constant 1.000000e+00 : f32
    %74 = vector.broadcast %cst_37 : f32 to vector<8x256xf32>
    %75 = arith.cmpf oge, %73, %74 : vector<8x256xf32>
    %76 = arith.extui %75 : vector<8x256xi1> to vector<8x256xi32>
    %77 = arith.sitofp %76 : vector<8x256xi32> to vector<8x256xf32>
    %cst_38 = arith.constant 1.000000e+00 : f32
    %78 = vector.broadcast %cst_38 : f32 to vector<8x256xf32>
    %79 = arith.subf %78, %77 : vector<8x256xf32>
    %80 = arith.mulf %73, %79 : vector<8x256xf32>
    %c0_39 = arith.constant 0 : index
    %c0_40 = arith.constant 0 : index
    %81 = vector.load %arg6[%c0_39, %c0_40] : memref<8x256xf32, #tpu.memory_space<vmem>>, vector<8x256xf32>
    tpu.vector_store %arg6[%c0_39, %c0_40], %80 {strides = array<i32>} : memref<8x256xf32, #tpu.memory_space<vmem>>, vector<8x256xf32>,
    %82 = arith.truncf %77 : vector<8x256xf32> to vector<8x256xbf16>
    %c0_41 = arith.constant 0 : index
    %c0_42 = arith.constant 0 : index
    %c0_43 = arith.constant 0 : index
    %83 = vector.load %arg5[%c0_41, %c0_42, %c0_43] : memref<1x8x256xbf16, #tpu.memory_space<vmem>>, vector<1x8x256xbf16>
    %84 = vector.shape_cast %83 : vector<1x8x256xbf16> to vector<8x256xbf16>
    %85 = vector.shape_cast %82 : vector<8x256xbf16> to vector<1x8x256xbf16>
    tpu.vector_store %arg5[%c0_41, %c0_42, %c0_43], %85 {strides = array<i32>} : memref<1x8x256xbf16, #tpu.memory_space<vmem>>, vector<1x8x256xbf16>,
    return
  }
  func.func @transform_0(%arg0: i32) -> (i32, i32, i32) {
    %c0_i32 = arith.constant 0 : i32
    %c0_i32_0 = arith.constant 0 : i32
    %c0_i32_1 = arith.constant 0 : i32
    return %arg0, %c0_i32, %c0_i32_0 : i32, i32, i32
  }
  func.func @transform_1(%arg0: i32) -> (i32, i32, i32) {
    %c0_i32 = arith.constant 0 : i32
    %c0_i32_0 = arith.constant 0 : i32
    %c0_i32_1 = arith.constant 0 : i32
    %c0_i32_2 = arith.constant 0 : i32
    return %c0_i32, %c0_i32_0, %c0_i32_1 : i32, i32, i32
  }
  func.func @transform_2(%arg0: i32) -> (i32, i32) {
    %c0_i32 = arith.constant 0 : i32
    %c0_i32_0 = arith.constant 0 : i32
    %c0_i32_1 = arith.constant 0 : i32
    return %c0_i32, %c0_i32_0 : i32, i32
  }
  func.func @transform_3(%arg0: i32) -> (i32, i32) {
    %c0_i32 = arith.constant 0 : i32
    %c0_i32_0 = arith.constant 0 : i32
    %c0_i32_1 = arith.constant 0 : i32
    return %c0_i32, %c0_i32_0 : i32, i32
  }
  func.func @transform_4(%arg0: i32) -> (i32, i32, i32) {
    %c0_i32 = arith.constant 0 : i32
    %c0_i32_0 = arith.constant 0 : i32
    %c0_i32_1 = arith.constant 0 : i32
    return %arg0, %c0_i32, %c0_i32_0 : i32, i32, i32
  }
}

module attributes {stable_mosaic.version = 11 : i64} {
  func.func @_conv1x1_bn_if_res_kernel(%arg0: i32, %arg1: i32, %arg2: memref<1x8x128xbf16, #tpu.memory_space<vmem>>, %arg3: memref<1x32x128xbf16, #tpu.memory_space<vmem>>, %arg4: memref<32x8xbf16, #tpu.memory_space<vmem>>, %arg5: memref<32x1xf32, #tpu.memory_space<vmem>>, %arg6: memref<32x1xf32, #tpu.memory_space<vmem>>, %arg7: memref<1x32x128xbf16, #tpu.memory_space<vmem>>, %arg8: memref<32x128xf32, #tpu.memory_space<vmem>>) attributes {dimension_semantics = [#tpu.dimension_semantics<parallel>, #tpu.dimension_semantics<arbitrary>], iteration_bounds = array<i64: 2, 4>, scalar_prefetch = 0 : i64, scratch_operands = 1 : i64, tpu.core_type = #tpu.core_type<tc>, window_params = [{transform_indices = @transform_0, window_bounds = array<i64: 1, 8, 128>}, {transform_indices = @transform_1, window_bounds = array<i64: 1, 32, 128>}, {pipeline_mode = #tpu.pipeline_mode<synchronous>, transform_indices = @transform_2, window_bounds = array<i64: 32, 8>}, {pipeline_mode = #tpu.pipeline_mode<synchronous>, transform_indices = @transform_3, window_bounds = array<i64: 32, 1>}, {pipeline_mode = #tpu.pipeline_mode<synchronous>, transform_indices = @transform_4, window_bounds = array<i64: 32, 1>}, {transform_indices = @transform_5, window_bounds = array<i64: 1, 32, 128>}]} {
    %c0_i32 = arith.constant 0 : i32
    %0 = arith.cmpi eq, %arg1, %c0_i32 : i32
    %1 = arith.extui %0 : i1 to i32
    %c0_i32_0 = arith.constant 0 : i32
    %2 = arith.cmpi ne, %1, %c0_i32_0 : i32
    scf.if %2 {
      %cst_21 = arith.constant 0.000000e+00 : f32
      %31 = vector.broadcast %cst_21 : f32 to vector<32x128xf32>
      %c0_22 = arith.constant 0 : index
      %c0_23 = arith.constant 0 : index
      %32 = vector.load %arg8[%c0_22, %c0_23] : memref<32x128xf32, #tpu.memory_space<vmem>>, vector<32x128xf32>
      tpu.vector_store %arg8[%c0_22, %c0_23], %31 {strides = array<i32>} : memref<32x128xf32, #tpu.memory_space<vmem>>, vector<32x128xf32>,
    } else {
    }
    %c0 = arith.constant 0 : index
    %c0_1 = arith.constant 0 : index
    %3 = vector.load %arg4[%c0, %c0_1] : memref<32x8xbf16, #tpu.memory_space<vmem>>, vector<32x8xbf16>
    %c0_2 = arith.constant 0 : index
    %c0_3 = arith.constant 0 : index
    %c0_4 = arith.constant 0 : index
    %4 = vector.load %arg2[%c0_2, %c0_3, %c0_4] : memref<1x8x128xbf16, #tpu.memory_space<vmem>>, vector<1x8x128xbf16>
    %5 = vector.shape_cast %4 : vector<1x8x128xbf16> to vector<8x128xbf16>
    %cst = arith.constant dense<0.000000e+00> : vector<32x128xf32>
    %6 = tpu.matmul %3, %5, %cst {dimension_numbers = #tpu.dot_dimension_numbers<[1], [0], [0], [1], [0, 0, 1, 1], [], []>} : vector<32x8xbf16>, vector<8x128xbf16>, vector<32x128xf32> -> vector<32x128xf32>
    %c0_5 = arith.constant 0 : index
    %c0_6 = arith.constant 0 : index
    %7 = vector.load %arg5[%c0_5, %c0_6] : memref<32x1xf32, #tpu.memory_space<vmem>>, vector<32x1xf32>
    %8 = vector.broadcast %7 : vector<32x1xf32> to vector<32x128xf32>
    %9 = arith.mulf %6, %8 : vector<32x128xf32>
    %c0_7 = arith.constant 0 : index
    %c0_8 = arith.constant 0 : index
    %10 = vector.load %arg6[%c0_7, %c0_8] : memref<32x1xf32, #tpu.memory_space<vmem>>, vector<32x1xf32>
    %11 = vector.broadcast %10 : vector<32x1xf32> to vector<32x128xf32>
    %12 = arith.addf %9, %11 : vector<32x128xf32>
    %c0_9 = arith.constant 0 : index
    %c0_10 = arith.constant 0 : index
    %c0_11 = arith.constant 0 : index
    %13 = vector.load %arg3[%c0_9, %c0_10, %c0_11] : memref<1x32x128xbf16, #tpu.memory_space<vmem>>, vector<1x32x128xbf16>
    %14 = vector.shape_cast %13 : vector<1x32x128xbf16> to vector<32x128xbf16>
    %15 = arith.extf %14 : vector<32x128xbf16> to vector<32x128xf32>
    %16 = arith.addf %12, %15 : vector<32x128xf32>
    %c0_12 = arith.constant 0 : index
    %c0_13 = arith.constant 0 : index
    %17 = vector.load %arg8[%c0_12, %c0_13] : memref<32x128xf32, #tpu.memory_space<vmem>>, vector<32x128xf32>
    %18 = arith.addf %17, %16 : vector<32x128xf32>
    %cst_14 = arith.constant 1.000000e+00 : f32
    %19 = vector.broadcast %cst_14 : f32 to vector<32x128xf32>
    %20 = arith.cmpf oge, %18, %19 : vector<32x128xf32>
    %21 = arith.extui %20 : vector<32x128xi1> to vector<32x128xi32>
    %22 = arith.sitofp %21 : vector<32x128xi32> to vector<32x128xf32>
    %cst_15 = arith.constant 1.000000e+00 : f32
    %23 = vector.broadcast %cst_15 : f32 to vector<32x128xf32>
    %24 = arith.subf %23, %22 : vector<32x128xf32>
    %25 = arith.mulf %18, %24 : vector<32x128xf32>
    %c0_16 = arith.constant 0 : index
    %c0_17 = arith.constant 0 : index
    %26 = vector.load %arg8[%c0_16, %c0_17] : memref<32x128xf32, #tpu.memory_space<vmem>>, vector<32x128xf32>
    tpu.vector_store %arg8[%c0_16, %c0_17], %25 {strides = array<i32>} : memref<32x128xf32, #tpu.memory_space<vmem>>, vector<32x128xf32>,
    %27 = arith.truncf %22 : vector<32x128xf32> to vector<32x128xbf16>
    %c0_18 = arith.constant 0 : index
    %c0_19 = arith.constant 0 : index
    %c0_20 = arith.constant 0 : index
    %28 = vector.load %arg7[%c0_18, %c0_19, %c0_20] : memref<1x32x128xbf16, #tpu.memory_space<vmem>>, vector<1x32x128xbf16>
    %29 = vector.shape_cast %28 : vector<1x32x128xbf16> to vector<32x128xbf16>
    %30 = vector.shape_cast %27 : vector<32x128xbf16> to vector<1x32x128xbf16>
    tpu.vector_store %arg7[%c0_18, %c0_19, %c0_20], %30 {strides = array<i32>} : memref<1x32x128xbf16, #tpu.memory_space<vmem>>, vector<1x32x128xbf16>,
    return
  }
  func.func @transform_0(%arg0: i32, %arg1: i32) -> (i32, i32, i32) {
    %c0_i32 = arith.constant 0 : i32
    %c0_i32_0 = arith.constant 0 : i32
    return %arg1, %c0_i32, %arg0 : i32, i32, i32
  }
  func.func @transform_1(%arg0: i32, %arg1: i32) -> (i32, i32, i32) {
    %c0_i32 = arith.constant 0 : i32
    %c0_i32_0 = arith.constant 0 : i32
    return %arg1, %c0_i32, %arg0 : i32, i32, i32
  }
  func.func @transform_2(%arg0: i32, %arg1: i32) -> (i32, i32) {
    %c0_i32 = arith.constant 0 : i32
    %c0_i32_0 = arith.constant 0 : i32
    %c0_i32_1 = arith.constant 0 : i32
    return %c0_i32, %c0_i32_0 : i32, i32
  }
  func.func @transform_3(%arg0: i32, %arg1: i32) -> (i32, i32) {
    %c0_i32 = arith.constant 0 : i32
    %c0_i32_0 = arith.constant 0 : i32
    %c0_i32_1 = arith.constant 0 : i32
    return %c0_i32, %c0_i32_0 : i32, i32
  }
  func.func @transform_4(%arg0: i32, %arg1: i32) -> (i32, i32) {
    %c0_i32 = arith.constant 0 : i32
    %c0_i32_0 = arith.constant 0 : i32
    %c0_i32_1 = arith.constant 0 : i32
    return %c0_i32, %c0_i32_0 : i32, i32
  }
  func.func @transform_5(%arg0: i32, %arg1: i32) -> (i32, i32, i32) {
    %c0_i32 = arith.constant 0 : i32
    %c0_i32_0 = arith.constant 0 : i32
    return %arg1, %c0_i32, %arg0 : i32, i32, i32
  }
}

</mosaic_0001>

<bundles_post_ra>
// kernel: bottleneck_forward.5
= control target key start
LH: loop header
LB: loop body
LE: loop exit
PB: predicated region body
PF: predicated region fallthrough
CT: control target
= control target key end

     0   :  { %s841_s18 = smov 0   ;;  %s843_s19 = smov 0   ;;  %s991_s0 = inlined_call_operand.vmem [shape: bf16[4,8,256], index: 0, kind: input, shape index: {}]   ;;  %s992_s1 = inlined_call_operand.vmem [shape: bf16[4,32,256], index: 1, kind: input, shape index: {}]   ;;  %s993_s2 = inlined_call_operand.vmem [shape: bf16[32,8], index: 2, kind: input, shape index: {}]   ;;  %s994_s3 = inlined_call_operand.vmem [shape: f32[32,1], index: 3, kind: input, shape index: {}]   ;;  %s995_s4 = inlined_call_operand.vmem [shape: f32[32,1], index: 4, kind: input, shape index: {}]   ;;  %s996_s5 = inlined_call_operand.vmem [shape: bf16[4,32,256], index: 5, kind: output, shape index: {}]  }
   0x1   :  { %s845_s20 = smov 0   ;;  %s847_s21 = smov 0  }
   0x2   :  { %s849_s22 = smov 0   ;;  %s851_s23 = smov 0  }
   0x3   :  { %s853_s24 = smov 0  }
   0x4 LB: > { %s24_s25 = sadd.s32 1, %s798_s22  ;;  %s27_s26 = sadd.s32 1, %s802_s23  ;;  %s806_s24 = sphi %s853_s24, %s15_s24   ;;  %s802_s23 = sphi %s851_s23, %s1003_s23   ;;  %s798_s22 = sphi %s849_s22, %s1002_s22   ;;  %s794_s21 = sphi %s847_s21, %s1001_s21   ;;  %s790_s20 = sphi %s845_s20, %s1000_s20   ;;  %s786_s19 = sphi %s843_s19, %s999_s19   ;;  %s782_s18 = sphi %s841_s18, %s998_s18  }
   0x5   : > { %p25_p0 = scmp.ge.s32.totalorder %s24_s25, 4  ;;  %s639_s27 = sadd.s32 4294967295, %s806_s24  }
   0x6   : > { %p71_p1 = scmp.ne.s32.totalorder %s786_s19, %s782_s18  ;;  %p72_p2 = scmp.eq.s32.totalorder %s806_s24, 0 }
   0x7   : > { %s1005_s25 = smov (%p25_p0, %s24_s25), 0  ;;  %s1007_s26 = smov (!%p25_p0, %s27_s26), %s802_s23 }
   0x8   : > { %p29_p3 = scmp.ge.s32.totalorder %s1007_s26, 2  ;;  %p166_p4 = scmp.eq.s32.totalorder %s639_s27, 7 }
   0x9   : > { %s59_s28 = ssub.s32 %s798_s22, %s1005_s25  ;;  %p73_p5 = por %p72_p2, %p71_p1 }
   0xa   : > { %s1009_s26 = smov (%p29_p3, %s1007_s26), 0  ;;  %p889_p6 = por %p166_p4, %p71_p1 }
   0xb   : > { %s60_s30 = ssub.s32 %s802_s23, %s1009_s26  ;;  %s64_s7 = sadd.s32 1, %s786_s19 }
   0xc   : > { %s61_s6 = sor.u32 %s60_s30, %s59_s28  ;;  %p642_p8 = scmp.ge.s32.totalorder %s806_s24, 8 }
   0xd   : > { %p62_p7 = scmp.eq.s32.totalorder %s61_s6, 0 }
   0xe   : > { %197 = sbr.rel (%p642_p8) target bundleno = 29 (0x1d), region = 28 }
   0xf   : > { %s897_s8 = scalar_select %p62_p7, %s786_s19, %s64_s7  }
  0x13   : > { %211 = sbr.rel (!%p73_p5) target bundleno = 29 (0x1d), region = 36  ;;  %s213_s9 = sand.u32 (%p73_p5), 1, %s786_s19  }
  0x14   : > { %s644_s10 = sshll.u32 (%p73_p5), %s798_s22, 3  ;;  %s643_s11 = sshll.u32 (%p73_p5), %s213_s9, 4 }
  0x15   : > { %s217_s12 = sadd.s32 (%p73_p5), %s802_s23, %s644_s10  ;;  %s215_s17 = scalar_lea.vmem (%p73_p5), [#allocation3], %s643_s11 }
  0x16   : > { %s645_s13 = sshll.u32 (%p73_p5), %s217_s12, 2 }
  0x17   : > { %s219_s16 = scalar_lea.vmem (%p73_p5), %s992_s1, %s645_s13 }
  0x18   : > { %v236_v0 = vld [vmem:[%s219_s16] sm:$0xf]  ;;  %v238_v1 = vld [vmem:[%s219_s16 + $0x8] sm:$0xf]  ;;  %v240_v2 = vld [vmem:[%s219_s16 + $0x10] sm:$0xf] }
  0x19   : > { %237 = vst [vmem:[%s215_s17] sm:$0xf] %v236_v0  ;;  %v242_v3 = vld [vmem:[%s219_s16 + $0x18] sm:$0xf] }
  0x1a   : > { %239 = vst [vmem:[%s215_s17 + $0x4] sm:$0xf] %v238_v1 }
  0x1b   : > { %241 = vst [vmem:[%s215_s17 + $0x8] sm:$0xf] %v240_v2 }
  0x1c   : > { %243 = vst [vmem:[%s215_s17 + $0xc] sm:$0xf] %v242_v3 }
  0x1d PF: > { %p646_p9 = scmp.ge.s32.totalorder %s806_s24, 1  ;;  %p274_p10 = scmp.lt.s32.totalorder %s806_s24, 9 }
  0x1f   : > { %p275_p11 = pnand %p646_p9, %p274_p10 }
  0x20   : > { %s281_s27 = sand.u32 (!%p275_p11), 1, %s782_s18   ;;  %p315_p12 = scmp.lt.s32.totalorder (!%p275_p11), %s790_s20, 3 }
  0x21   : > { %278 = sbr.rel (%p275_p11) target bundleno = 214 (0xd6), region = 77  ;;  %s910_s28 = sshll.u32 (!%p275_p11), %s281_s27, 4 }
  0x22   : > { %p317_p13 = scmp.lt.s32.totalorder (!%p275_p11), %s794_s21, 1  ;;  %s283_s14 = scalar_lea.vmem (!%p275_p11), [#allocation3], %s910_s28 }
  0x23   : > { %s920_s15 = scalar_lea.vmem (!%p275_p11), [#allocation4], %s910_s28  ;;  %p651_p0 = scmp.ne.s32.totalorder (!%p275_p11), %s790_s20, 0 }
  0x26   : > { %s316_s30 = scalar_select %p315_p12, %s790_s20, 3 }
  0x27   : > { %s318_s6 = scalar_select %p317_p13, %s794_s21, 1 }
  0x28   : > { %s649_s7 = sshll.u32 %s316_s30, 1  ;;  %327 = sbr.rel (%p651_p0) target bundleno = 50 (0x32), region = 85 }
  0x29   : > { %s320_s9 = sadd.s32 %s649_s7, %s318_s6 }
  0x2a   : > { %s650_s10 = sshll.u32 %s320_s9, 2 }
  0x2b   : > { %s322_s13 = scalar_lea.vmem %s991_s0, %s650_s10 }
  0x2d   : > { %v808_v4 = vmov 0.0  }
  0x2e   : > { %328 = vst [vmem:[#allocation2 + $0x10] sm:$0xff] %v808_v4 }
  0x2f   : > { %329 = vst [vmem:[#allocation2] sm:$0xff] %v808_v4 }
  0x30   : > { %330 = vst [vmem:[#allocation2 + $0x18] sm:$0xff] %v808_v4 }
  0x31   : > { %331 = vst [vmem:[#allocation2 + $0x8] sm:$0xff] %v808_v4 }
  0x32 PF: > { %v379_v5 = vld [vmem:[%s994_s3 + $0x10] sm:$0xff]  ;;  %v377_v6 = vld [vmem:[%s994_s3] sm:$0xff]  ;;  %vm354_vm0 = vcmask 1043456   ;;  %v809_v8 = vmov 0   ;;  %v672_v11 = vld [vmem:[%s993_s2 + $0x8] sm:$0xff]  ;;  %vm347_vm1 = vcmask 64512  }
  0x33   : > { %v336_v7 = vld [vmem:[%s322_s13] sm:$0xf]  ;;  %750 = vset.pattern.permute.xlu1 %v809_v8  ;;  %749 = vset.pattern.permute.xlu0 %v809_v8  ;;  %v380_v13 = vld [vmem:[%s994_s3 + $0x18] sm:$0xff]  ;;  %v378_v14 = vld [vmem:[%s994_s3 + $0x8] sm:$0xff]  ;;  %v810_v46 = vmov 0.0   ;;  %s667_s28 = sshll.u32 (%p889_p6), %s790_s20, 3 }
  0x34   : > { %v356_v9 = vsel %vm354_vm0, %v336_v7, 0  ;;  %393 = vperm.xlu1 %750, %v379_v5   ;;  %383 = vperm.xlu0 %749, %v377_v6   ;;  %v671_v10 = vld [vmem:[%s993_s2] sm:$0xff]  ;;  %v406_v15 = vld [vmem:[%s995_s4 + $0x8] sm:$0xff]  ;;  %v408_v16 = vld [vmem:[%s995_s4 + $0x18] sm:$0xff] }
  0x35   : > { %365 = vmatpush.bf16.msra.mxu0 %v356_v9  ;;  %689 = vmatpush.bf16.msra.mxu1 %v356_v9  ;;  %v405_v12 = vld [vmem:[%s995_s4] sm:$0xff]  ;;  %v407_v17 = vld [vmem:[%s995_s4 + $0x10] sm:$0xff]  ;;  %v687_v22 = vld [vmem:[%s283_s14 + $0x8] sm:$0xff]  }
  0x36   : > { %751 = vset.pattern.permute.xlu2 %v809_v8  ;;  %v674_v21 = vld [vmem:[%s283_s14] sm:$0xff]   ;;  %v679_v30 = vunpack.c.l.bf16 %v687_v22  ;;  %v680_v43 = vunpack.c.h.bf16 %v687_v22  ;;  %s493_s14 = sadd.s32 (%p889_p6), %s794_s21, %s667_s28 }
  0x37   : > { %411 = vperm.xlu2 %751, %v405_v12   ;;  %v675_v28 = vunpack.c.l.bf16 %v674_v21  ;;  %v445_v34 = vld [vmem:[#allocation2 + $0x10] sm:$0xff]  ;;  %v447_v35 = vld [vmem:[#allocation2 + $0x18] sm:$0xff]  ;;  %v676_v41 = vunpack.c.h.bf16 %v674_v21  ;;  %v446_v55 = vld [vmem:[#allocation2] sm:$0xff]  ;;  %s668_s10 = sshll.u32 (%p889_p6), %s493_s14, 2 }
  0x38   : > { %660 = vmatmul.msk.bf16.vlgmr.msra.gmra.mxu0 %vm347_vm1, %v671_v10  ;;  %661 = vmatmul.msk.bf16.vlgmr.msra.gmra.mxu1 %vm347_vm1, %v672_v11  ;;  %v448_v56 = vld [vmem:[#allocation2 + $0x8] sm:$0xff]  ;;  %s495_s13 = scalar_lea.vmem (%p889_p6), %s996_s5, %s668_s10 }
  0x3c   : > { %398 = vperm.xlu1 %750, %v380_v13   ;;  %388 = vperm.xlu0 %749, %v378_v14  }
  0x3f   : > { %416 = vperm.xlu2 %751, %v406_v15  }
  0x44   : > { %426 = vperm.xlu1 %750, %v408_v16   ;;  %421 = vperm.xlu0 %749, %v407_v17  }
  0x91   : > { %v412_v23 = vpop.permute.xlu2 %411 }
  0x99   : > { %v417_v48 = vpop.permute.xlu2 %416 }
  0xa6   : > { %v384_v18 = vpop.permute.xlu0 %383  ;;  %v394_v19 = vpop.permute.xlu1 %393 }
  0xae   : > { %v389_v20 = vpop.permute.xlu0 %388  ;;  %v399_v24 = vpop.permute.xlu1 %398 }
  0xb5   : > { %v367_v25 = vpop.f32.mrf.mxu0  ;;  %v372_v26 = vpop.f32.mrf.mxu1 }
  0xb6   : > { %v401_v27 = vmul.f32 %v384_v18, %v367_v25  ;;  %v403_v29 = vmul.f32 %v394_v19, %v372_v26  ;;  %v422_v31 = vpop.permute.xlu0 %421  ;;  %v427_v49 = vpop.permute.xlu1 %426 }
  0xb8   : > { %v429_v32 = vadd.f32 %v412_v23, %v401_v27  ;;  %v431_v33 = vadd.f32 %v422_v31, %v403_v29 }
  0xba   : > { %v441_v36 = vadd.f32 %v675_v28, %v429_v32  ;;  %v443_v37 = vadd.f32 %v679_v30, %v431_v33 }
  0xbc   : > { %v449_v38 = vadd.f32 %v445_v34, %v441_v36  ;;  %v451_v39 = vadd.f32 %v447_v35, %v443_v37 }
  0xbd   : > { %v369_v40 = vpop.f32.mrf.mxu0  ;;  %v374_v42 = vpop.f32.mrf.mxu1 }
  0xbe   : > { %vm453_vm2 = vcmp.ge.f32.partialorder %v449_v38, 1.0  ;;  %vm455_vm3 = vcmp.ge.f32.partialorder %v451_v39, 1.0  ;;  %v402_v44 = vmul.f32 %v389_v20, %v369_v40  ;;  %v404_v45 = vmul.f32 %v399_v24, %v374_v42 }
  0xbf   : > { %v662_v47 = vsel %vm453_vm2, 1.0, %v810_v46  ;;  %v664_v50 = vsel %vm455_vm3, 1.0, %v810_v46 }
  0xc0   : > { %v465_v51 = vsub.f32 1.0, %v662_v47  ;;  %v467_v52 = vsub.f32 1.0, %v664_v50  ;;  %v430_v53 = vadd.f32 %v417_v48, %v402_v44  ;;  %v432_v54 = vadd.f32 %v427_v49, %v404_v45 }
  0xc2   : > { %v469_v57 = vmul.f32 %v465_v51, %v449_v38  ;;  %v471_v58 = vmul.f32 %v467_v52, %v451_v39  ;;  %v442_v59 = vadd.f32 %v676_v41, %v430_v53  ;;  %v444_v60 = vadd.f32 %v680_v43, %v432_v54 }
  0xc4   : > { %473 = vst [vmem:[#allocation2 + $0x10] sm:$0xff] %v469_v57  ;;  %v450_v61 = vadd.f32 %v446_v55, %v442_v59  ;;  %v452_v62 = vadd.f32 %v448_v56, %v444_v60 }
  0xc5   : > { %475 = vst [vmem:[#allocation2 + $0x18] sm:$0xff] %v471_v58 }
  0xc6   : > { %vm454_vm4 = vcmp.ge.f32.partialorder %v450_v61, 1.0  ;;  %vm456_vm5 = vcmp.ge.f32.partialorder %v452_v62, 1.0 }
  0xc7   : > { %v663_v63 = vsel %vm454_vm4, 1.0, %v810_v46  ;;  %v665_v0 = vsel %vm456_vm5, 1.0, %v810_v46 }
  0xc8   : > { %v466_v1 = vsub.f32 1.0, %v663_v63  ;;  %v682_v2 = vpack.c.bf16 %v663_v63, %v662_v47  ;;  %v468_v3 = vsub.f32 1.0, %v665_v0  ;;  %v685_v4 = vpack.c.bf16 %v665_v0, %v664_v50 }
  0xc9   : > { %491 = sbr.rel (!%p889_p6) target bundleno = 214 (0xd6), region = 89 }
  0xca   : > { %v470_v5 = vmul.f32 %v466_v1, %v450_v61  ;;  %683 = vst [vmem:[%s920_s15] sm:$0xff] %v682_v2   ;;  %v472_v6 = vmul.f32 %v468_v3, %v452_v62 }
  0xcb   : > { %688 = vst [vmem:[%s920_s15 + $0x8] sm:$0xff] %v685_v4  }
  0xcc   : > { %474 = vst [vmem:[#allocation2] sm:$0xff] %v470_v5 }
  0xcd   : > { %476 = vst [vmem:[#allocation2 + $0x8] sm:$0xff] %v472_v6 }
  0xd1   : > { %v512_v7 = vld [vmem:[%s920_s15] sm:$0xf]  ;;  %v514_v8 = vld [vmem:[%s920_s15 + $0x4] sm:$0xf] }
  0xd2   : > { %v516_v9 = vld [vmem:[%s920_s15 + $0x8] sm:$0xf]  ;;  %513 = vst [vmem:[%s495_s13] sm:$0xf] %v512_v7  ;;  %v518_v10 = vld [vmem:[%s920_s15 + $0xc] sm:$0xf] }
  0xd3   : > { %515 = vst [vmem:[%s495_s13 + $0x8] sm:$0xf] %v514_v8 }
  0xd4   : > { %517 = vst [vmem:[%s495_s13 + $0x10] sm:$0xf] %v516_v9 }
  0xd5   : > { %519 = vst [vmem:[%s495_s13 + $0x18] sm:$0xf] %v518_v10 }
  0xd6 PF: > { %s15_s24 = sadd.s32 1, %s806_s24   ;;  %s998_s18 = smov %s786_s19 }
  0xd7   : > { %p12_p1 = scmp.ge.s32.totalorder %s15_s24, 10   ;;  %s999_s19 = smov %s897_s8 }
  0xd8   : > { %s1000_s20 = smov %s798_s22  ;;  %s1001_s21 = smov %s802_s23 }
  0xd9   : > { %s1002_s22 = smov %s1005_s25  ;;  %s1003_s23 = smov %s1009_s26 }
  0xda   :  { %14 = sbr.rel (!%p12_p1) target bundleno = 4 (0x4), region = 164 }

// kernel: bottleneck_forward.4
= control target key start
LH: loop header
LB: loop body
LE: loop exit
PB: predicated region body
PF: predicated region fallthrough
CT: control target
= control target key end

     0   :  { %s828_s15 = smov 0   ;;  %s917_s0 = inlined_call_operand.vmem [shape: bf16[4,8,256], index: 0, kind: input, shape index: {}]   ;;  %s918_s1 = inlined_call_operand.vmem [shape: bf16[9,8,8], index: 1, kind: input, shape index: {}]   ;;  %s919_s2 = inlined_call_operand.vmem [shape: f32[8,1], index: 2, kind: input, shape index: {}]   ;;  %s920_s3 = inlined_call_operand.vmem [shape: f32[8,1], index: 3, kind: input, shape index: {}]   ;;  %s921_s4 = inlined_call_operand.vmem [shape: bf16[4,8,256], index: 4, kind: output, shape index: {}]  }
   0x1 LB: > { %s720_s16 = sadd.s32 4294967295, %s790_s15   ;;  %p724_p0 = scmp.ge.s32.totalorder %s790_s15, 1  ;;  %s790_s15 = sphi %s828_s15, %s14_s15  }
   0x2   : > { %p162_p1 = scmp.lt.s32.totalorder %s790_s15, 5 }
   0x4   : > { %p163_p2 = pnand %p724_p0, %p162_p1 }
   0x5   : > { %p188_p3 = scmp.lt.s32.totalorder (!%p163_p2), %s720_s16, 3  ;;  %p729_p4 = scmp.ne.s32.totalorder (!%p163_p2), %s720_s16, 0 }
   0x6   : > { %166 = sbr.rel (%p163_p2) target bundleno = 360 (0x168), region = 36 }
   0xb   : > { %s189_s17 = scalar_select %p188_p3, %s720_s16, 3 }
   0xc   : > { %202 = sbr.rel (%p729_p4) target bundleno = 20 (0x14), region = 40 }
   0xd   : > { %s760_s18 = sshll.u32 %s189_s17, 3 }
   0xe   : > { %s192_s21 = scalar_lea.vmem %s917_s0, %s760_s18  ;;  %s842_s24 = scalar_lea.vmem %s921_s4, %s760_s18 }
  0x11   : > { %v792_v0 = vmov 0.0  }
  0x12   : > { %203 = vst [vmem:[#allocation2] sm:$0xff] %v792_v0 }
  0x13   : > { %204 = vst [vmem:[#allocation2 + $0x8] sm:$0xff] %v792_v0 }
  0x14 PF: > { %v205_v1 = vld [vmem:[%s192_s21] sm:$0xff]  ;;  %s793_s25 = smov 11   ;;  %s794_s26 = smov 10   ;;  %vm308_vm0 = vcmask 72704   ;;  %vm226_vm1 = vcmask 80896   ;;  %vm215_vm2 = vcmask 89088  }
  0x15   : > { %v207_v2 = vunpack.c.h.b16 %v205_v1  ;;  %v211_v4 = vunpack.c.l.b16 %v205_v1  ;;  %s795_s27 = smov 9   ;;  %s796_s28 = smov 1   ;;  %vm238_vm3 = vcmask 1043456   ;;  %v730_v24 = vld [vmem:[%s918_s1 + $0x4] sm:$0xf]  ;;  %vm234_vm4 = vcmask 64512  }
  0x16   : > { %s797_s29 = smov 127   ;;  %s798_s30 = smov 119   ;;  %v221_v25 = vld [vmem:[%s918_s1] sm:$0xf]  ;;  %vm356_vm5 = vcmask 7168   ;;  %vm443_vm6 = vcmask 1039360  }
  0x17   : > { %v208_v3 = vpack.c.b16 %v207_v2, %v207_v2  ;;  %v212_v5 = vpack.c.b16 %v211_v4, %v211_v4  ;;  %s799_s5 = smov 118   ;;  %s800_s6 = smov 117   ;;  %vm491_vm7 = vcmask 973824   ;;  %v735_v44 = vld [vmem:[%s918_s1 + $0x8] sm:$0xf]  ;;  %vm539_vm8 = vcmask 965632  }
  0x18   : > { %v738_v45 = vld [vmem:[%s918_s1 + $0xc] sm:$0xf]  ;;  %vm587_vm9 = vcmask 957440   ;;  %v741_v58 = vld [vmem:[%s918_s1 + $0x10] sm:$0xf]  ;;  %v631_v62 = vld [vmem:[%s919_s2] sm:$0xff] }
  0x19   : > { %209 = vrot.lane.b32.xlu1 %v208_v3, %s793_s25  ;;  %222 = vrot.lane.b32.xlu0 %v208_v3, %s794_s26  ;;  %v406_v26 = vsel %vm238_vm3, %v212_v5, 0  ;;  %v409_v27 = vsel %vm238_vm3, %v208_v3, 0  ;;  %v744_v59 = vld [vmem:[%s918_s1 + $0x14] sm:$0xf]  ;;  %v639_v63 = vld [vmem:[%s920_s3] sm:$0xff]  ;;  %v801_v0 = vmov 0  }
  0x1a   : > { %304 = vrot.lane.b32.xlu2 %v208_v3, %s795_s27  ;;  %781 = vset.pattern.permute.xlu1 %v801_v0  ;;  %v747_v1 = vld [vmem:[%s918_s1 + $0x18] sm:$0xf]  ;;  %v750_v2 = vld [vmem:[%s918_s1 + $0x1c] sm:$0xf] }
  0x1b   : > { %782 = vset.pattern.permute.xlu2 %v801_v0  ;;  %783 = vset.pattern.permute.xlu0 %v801_v0 }
  0x21   : > { %213 = vrot.lane.b32.xlu1 %v212_v5, %s793_s25  ;;  %224 = vrot.lane.b32.xlu0 %v212_v5, %s794_s26 }
  0x22   : > { %306 = vrot.lane.b32.xlu2 %v212_v5, %s795_s27 }
  0x29   : > { %354 = vrot.lane.b32.xlu1 %v212_v5, %s796_s28  ;;  %352 = vrot.lane.b32.xlu0 %v208_v3, %s796_s28 }
  0x2a   : > { %439 = vrot.lane.b32.xlu2 %v212_v5, %s797_s29 }
  0x31   : > { %441 = vrot.lane.b32.xlu0 %v208_v3, %s797_s29  ;;  %487 = vrot.lane.b32.xlu1 %v212_v5, %s798_s30 }
  0x32   : > { %489 = vrot.lane.b32.xlu2 %v208_v3, %s798_s30 }
  0x39   : > { %537 = vrot.lane.b32.xlu1 %v208_v3, %s799_s5  ;;  %535 = vrot.lane.b32.xlu0 %v212_v5, %s799_s5 }
  0x3a   : > { %583 = vrot.lane.b32.xlu2 %v212_v5, %s800_s6 }
  0x41   : > { %585 = vrot.lane.b32.xlu0 %v208_v3, %s800_s6  ;;  %634 = vperm.xlu1 %781, %v631_v62   ;;  %v753_v3 = vld [vmem:[%s918_s1 + $0x20] sm:$0xf] }
  0x42   : > { %642 = vperm.xlu2 %782, %v639_v63  }
  0x74   : > { %v305_v6 = vpop.permute.xlu2 %304 }
  0x7c   : > { %v307_v9 = vpop.permute.xlu2 %306 }
  0x7d   : > { %v313_v10 = vsel %vm308_vm0, %v305_v6, %v307_v9  ;;  %v309_v11 = vsel %vm308_vm0, %v307_v9, %v305_v6 }
  0x7e   : > { %v319_v14 = vsel %vm238_vm3, %v313_v10, 0  ;;  %v322_v15 = vsel %vm238_vm3, %v309_v11, 0 }
  0x84   : > { %v440_v28 = vpop.permute.xlu2 %439 }
  0x8b   : > { %v210_v7 = vpop.permute.xlu1 %209  ;;  %v223_v8 = vpop.permute.xlu0 %222 }
  0x8c   : > { %v490_v35 = vpop.permute.xlu2 %489 }
  0x93   : > { %v214_v12 = vpop.permute.xlu1 %213  ;;  %v225_v13 = vpop.permute.xlu0 %224 }
  0x94   : > { %v231_v16 = vsel %vm226_vm1, %v223_v8, %v225_v13  ;;  %v227_v17 = vsel %vm226_vm1, %v225_v13, %v223_v8  ;;  %v220_v18 = vsel %vm215_vm2, %v210_v7, %v214_v12  ;;  %v216_v19 = vsel %vm215_vm2, %v214_v12, %v210_v7  ;;  %v584_v54 = vpop.permute.xlu2 %583 }
  0x95   : > { %v239_v20 = vsel %vm238_vm3, %v231_v16, 0  ;;  %v242_v21 = vsel %vm238_vm3, %v227_v17, 0  ;;  %v273_v22 = vsel %vm238_vm3, %v220_v18, 0  ;;  %v276_v23 = vsel %vm238_vm3, %v216_v19, 0 }
  0x96   : > { %251 = vmatpush.bf16.msra.mxu0 %v239_v20  ;;  %264 = vmatpush.bf16.msra.mxu1 %v242_v21 }
  0x97   : > { %285 = vmatpush.bf16.msra.mxu2 %v273_v22  ;;  %298 = vmatpush.bf16.msra.mxu3 %v276_v23 }
  0x99   : > { %731 = vmatmul.msk.bf16.vlgmr.msra.gmra.mxu0 %vm234_vm4, %v730_v24  ;;  %732 = vmatmul.msk.bf16.vlgmr.msra.gmra.mxu1 %vm234_vm4, %v730_v24 }
  0x9a   : > { %331 = vmatpush.bf16.msrb.mxu0 %v319_v14  ;;  %344 = vmatpush.bf16.msrb.mxu1 %v322_v15 }
  0x9b   : > { %733 = vmatmul.msk.bf16.vlgmr.msra.gmra.mxu2 %vm234_vm4, %v221_v25  ;;  %734 = vmatmul.msk.bf16.vlgmr.msra.gmra.mxu3 %vm234_vm4, %v221_v25  ;;  %v355_v29 = vpop.permute.xlu1 %354  ;;  %v353_v30 = vpop.permute.xlu0 %352 }
  0x9c   : > { %v361_v31 = vsel %vm356_vm5, %v353_v30, %v355_v29  ;;  %v357_v32 = vsel %vm356_vm5, %v355_v29, %v353_v30 }
  0x9d   : > { %v367_v33 = vsel %vm238_vm3, %v361_v31, 0  ;;  %v370_v34 = vsel %vm238_vm3, %v357_v32, 0 }
  0x9e   : > { %418 = vmatpush.bf16.msra.mxu0 %v406_v26  ;;  %431 = vmatpush.bf16.msra.mxu1 %v409_v27 }
  0x9f   : > { %379 = vmatpush.bf16.msrb.mxu2 %v367_v33  ;;  %392 = vmatpush.bf16.msrb.mxu3 %v370_v34 }
  0xa3   : > { %v442_v36 = vpop.permute.xlu0 %441  ;;  %v488_v37 = vpop.permute.xlu1 %487 }
  0xa4   : > { %v444_v38 = vsel %vm443_vm6, %v440_v28, %v442_v36  ;;  %v448_v39 = vsel %vm443_vm6, %v442_v36, %v440_v28  ;;  %v492_v42 = vsel %vm491_vm7, %v488_v37, %v490_v35  ;;  %v496_v43 = vsel %vm491_vm7, %v490_v35, %v488_v37 }
  0xa5   : > { %v455_v40 = vsel %vm238_vm3, %v444_v38, 0  ;;  %v457_v41 = vsel %vm238_vm3, %v448_v39, 0  ;;  %v503_v46 = vsel %vm238_vm3, %v492_v42, 0  ;;  %v505_v47 = vsel %vm238_vm3, %v496_v43, 0 }
  0xa6   : > { %466 = vmatpush.bf16.msra.mxu2 %v455_v40  ;;  %479 = vmatpush.bf16.msra.mxu3 %v457_v41 }
  0xa9   : > { %736 = vmatmul.msk.bf16.vlgmr.msrb.gmra.mxu0 %vm234_vm4, %v735_v44  ;;  %737 = vmatmul.msk.bf16.vlgmr.msrb.gmra.mxu1 %vm234_vm4, %v735_v44 }
  0xaa   : > { %514 = vmatpush.bf16.msrb.mxu0 %v503_v46  ;;  %527 = vmatpush.bf16.msrb.mxu1 %v505_v47 }
  0xab   : > { %739 = vmatmul.msk.bf16.vlgmr.msrb.gmra.mxu2 %vm234_vm4, %v738_v45  ;;  %740 = vmatmul.msk.bf16.vlgmr.msrb.gmra.mxu3 %vm234_vm4, %v738_v45  ;;  %v538_v48 = vpop.permute.xlu1 %537  ;;  %v536_v49 = vpop.permute.xlu0 %535 }
  0xac   : > { %v540_v50 = vsel %vm539_vm8, %v536_v49, %v538_v48  ;;  %v544_v51 = vsel %vm539_vm8, %v538_v48, %v536_v49 }
  0xad   : > { %v551_v52 = vsel %vm238_vm3, %v540_v50, 0  ;;  %v553_v53 = vsel %vm238_vm3, %v544_v51, 0 }
  0xae   : > { %562 = vmatpush.bf16.msrb.mxu2 %v551_v52  ;;  %575 = vmatpush.bf16.msrb.mxu3 %v553_v53 }
  0xb3   : > { %v586_v55 = vpop.permute.xlu0 %585  ;;  %v635_v46 = vpop.permute.xlu1 %634 }
  0xb4   : > { %v588_v56 = vsel %vm587_vm9, %v584_v54, %v586_v55  ;;  %v592_v57 = vsel %vm587_vm9, %v586_v55, %v584_v54  ;;  %v643_v55 = vpop.permute.xlu2 %642 }
  0xb5   : > { %v599_v60 = vsel %vm238_vm3, %v588_v56, 0  ;;  %v601_v61 = vsel %vm238_vm3, %v592_v57, 0 }
  0xb9   : > { %742 = vmatmul.msk.bf16.vlgmr.msra.gmra.mxu0 %vm234_vm4, %v741_v58  ;;  %743 = vmatmul.msk.bf16.vlgmr.msra.gmra.mxu1 %vm234_vm4, %v741_v58  ;;  %v647_v58 = vld [vmem:[#allocation2] sm:$0xff] }
  0xba   : > { %610 = vmatpush.bf16.msra.mxu0 %v599_v60  ;;  %623 = vmatpush.bf16.msra.mxu1 %v601_v61 }
  0xbb   : > { %745 = vmatmul.msk.bf16.vlgmr.msra.gmra.mxu2 %vm234_vm4, %v744_v59  ;;  %746 = vmatmul.msk.bf16.vlgmr.msra.gmra.mxu3 %vm234_vm4, %v744_v59  ;;  %v648_v59 = vld [vmem:[#allocation2 + $0x8] sm:$0xff] }
  0xc9   : > { %748 = vmatmul.msk.bf16.vlgmr.msrb.gmra.mxu0 %vm234_vm4, %v747_v1  ;;  %749 = vmatmul.msk.bf16.vlgmr.msrb.gmra.mxu1 %vm234_vm4, %v747_v1 }
  0xcb   : > { %751 = vmatmul.msk.bf16.vlgmr.msrb.gmra.mxu2 %vm234_vm4, %v750_v2  ;;  %752 = vmatmul.msk.bf16.vlgmr.msrb.gmra.mxu3 %vm234_vm4, %v750_v2  ;;  %v802_v2 = vmov 0.0  }
  0xd9   : > { %754 = vmatmul.msk.bf16.vlgmr.msra.gmra.mxu0 %vm234_vm4, %v753_v3  ;;  %755 = vmatmul.msk.bf16.vlgmr.msra.gmra.mxu1 %vm234_vm4, %v753_v3 }
 0x116   : > { %v253_v4 = vpop.f32.mrf.mxu0  ;;  %v266_v5 = vpop.f32.mrf.mxu1 }
 0x11e   : > { %v287_v6 = vpop.f32.mrf.mxu2  ;;  %v300_v7 = vpop.f32.mrf.mxu3 }
 0x11f   : > { %v255_v8 = vpop.f32.mrf.mxu0  ;;  %v268_v9 = vpop.f32.mrf.mxu1  ;;  %v288_v30 = vadd.f32 %v287_v6, %v253_v4  ;;  %v301_v31 = vadd.f32 %v300_v7, %v266_v5 }
 0x126   : > { %v289_v10 = vpop.f32.mrf.mxu2  ;;  %v302_v11 = vpop.f32.mrf.mxu3 }
 0x127   : > { %v333_v12 = vpop.f32.mrf.mxu0  ;;  %v346_v13 = vpop.f32.mrf.mxu1 }
 0x128   : > { %v350_v32 = vadd.f32 %v333_v12, %v288_v30  ;;  %v351_v33 = vadd.f32 %v346_v13, %v301_v31 }
 0x12e   : > { %v381_v14 = vpop.f32.mrf.mxu2  ;;  %v394_v15 = vpop.f32.mrf.mxu3 }
 0x12f   : > { %v335_v16 = vpop.f32.mrf.mxu0  ;;  %v348_v17 = vpop.f32.mrf.mxu1  ;;  %v398_v34 = vadd.f32 %v381_v14, %v350_v32  ;;  %v399_v35 = vadd.f32 %v394_v15, %v351_v33 }
 0x136   : > { %v383_v18 = vpop.f32.mrf.mxu2  ;;  %v396_v19 = vpop.f32.mrf.mxu3 }
 0x137   : > { %v420_v20 = vpop.f32.mrf.mxu0  ;;  %v433_v21 = vpop.f32.mrf.mxu1 }
 0x138   : > { %v437_v40 = vadd.f32 %v420_v20, %v398_v34  ;;  %v438_v41 = vadd.f32 %v433_v21, %v399_v35 }
 0x13e   : > { %v468_v22 = vpop.f32.mrf.mxu2  ;;  %v481_v23 = vpop.f32.mrf.mxu3 }
 0x13f   : > { %v422_v24 = vpop.f32.mrf.mxu0  ;;  %v435_v25 = vpop.f32.mrf.mxu1  ;;  %v485_v42 = vadd.f32 %v468_v22, %v437_v40  ;;  %v486_v43 = vadd.f32 %v481_v23, %v438_v41 }
 0x146   : > { %v470_v26 = vpop.f32.mrf.mxu2  ;;  %v483_v27 = vpop.f32.mrf.mxu3 }
 0x147   : > { %v516_v28 = vpop.f32.mrf.mxu0  ;;  %v529_v29 = vpop.f32.mrf.mxu1 }
 0x148   : > { %v533_v44 = vadd.f32 %v516_v28, %v485_v42  ;;  %v534_v45 = vadd.f32 %v529_v29, %v486_v43 }
 0x14e   : > { %v564_v36 = vpop.f32.mrf.mxu2  ;;  %v577_v37 = vpop.f32.mrf.mxu3 }
 0x14f   : > { %v518_v38 = vpop.f32.mrf.mxu0  ;;  %v531_v39 = vpop.f32.mrf.mxu1  ;;  %v581_v47 = vadd.f32 %v564_v36, %v533_v44  ;;  %v582_v48 = vadd.f32 %v577_v37, %v534_v45 }
 0x156   : > { %v566_v49 = vpop.f32.mrf.mxu2  ;;  %v579_v50 = vpop.f32.mrf.mxu3 }
 0x157   : > { %v612_v51 = vpop.f32.mrf.mxu0  ;;  %v625_v52 = vpop.f32.mrf.mxu1 }
 0x158   : > { %v629_v53 = vadd.f32 %v612_v51, %v581_v47  ;;  %v630_v54 = vadd.f32 %v625_v52, %v582_v48 }
 0x15a   : > { %v637_v56 = vmul.f32 %v635_v46, %v629_v53  ;;  %v638_v57 = vmul.f32 %v635_v46, %v630_v54 }
 0x15c   : > { %v645_v60 = vadd.f32 %v643_v55, %v637_v56  ;;  %v646_v61 = vadd.f32 %v643_v55, %v638_v57 }
 0x15e   : > { %v649_v62 = vadd.f32 %v647_v58, %v645_v60  ;;  %v650_v63 = vadd.f32 %v648_v59, %v646_v61 }
 0x15f   : > { %v614_v0 = vpop.f32.mrf.mxu0  ;;  %v627_v1 = vpop.f32.mrf.mxu1 }
 0x160   : > { %vm651_vm10 = vcmp.ge.f32.partialorder %v649_v62, 1.0  ;;  %vm652_vm11 = vcmp.ge.f32.partialorder %v650_v63, 1.0 }
 0x161   : > { %v756_v3 = vsel %vm651_vm10, 1.0, %v802_v2  ;;  %v757_v4 = vsel %vm652_vm11, 1.0, %v802_v2 }
 0x162   : > { %v657_v5 = vsub.f32 1.0, %v756_v3  ;;  %v658_v6 = vsub.f32 1.0, %v757_v4  ;;  %v663_v7 = vpack.c.bf16 %v757_v4, %v756_v3 }
 0x164   : > { %v659_v8 = vmul.f32 %v657_v5, %v649_v62  ;;  %v660_v9 = vmul.f32 %v658_v6, %v650_v63  ;;  %664 = vst [vmem:[%s842_s24] sm:$0xff] %v663_v7 }
 0x166   : > { %661 = vst [vmem:[#allocation2] sm:$0xff] %v659_v8 }
 0x167   : > { %662 = vst [vmem:[#allocation2 + $0x8] sm:$0xff] %v660_v9 }
 0x168 PF: > { %s14_s15 = sadd.s32 1, %s790_s15  }
 0x169   : > { %p11_p5 = scmp.ge.s32.totalorder %s14_s15, 6  }
 0x16b   :  { %13 = sbr.rel (!%p11_p5) target bundleno = 1 (0x1), region = 78 }

// kernel: bottleneck_forward.3
= control target key start
LH: loop header
LB: loop body
LE: loop exit
PB: predicated region body
PF: predicated region fallthrough
CT: control target
= control target key end

     0   :  { %s660_s18 = smov 0   ;;  %s662_s19 = smov 0   ;;  %s776_s0 = inlined_call_operand.vmem [shape: bf16[4,32,256], index: 0, kind: input, shape index: {}]   ;;  %s777_s1 = inlined_call_operand.vmem [shape: bf16[8,32], index: 1, kind: input, shape index: {}]   ;;  %s778_s2 = inlined_call_operand.vmem [shape: f32[8,1], index: 2, kind: input, shape index: {}]   ;;  %s779_s3 = inlined_call_operand.vmem [shape: f32[8,1], index: 3, kind: input, shape index: {}]   ;;  %s780_s4 = inlined_call_operand.vmem [shape: f32[1,256], index: 4, kind: input, shape index: {}]   ;;  %s781_s5 = inlined_call_operand.vmem [shape: bf16[4,8,256], index: 5, kind: output, shape index: {}]  }
   0x1   :  { %s664_s20 = smov 0   ;;  %s666_s21 = smov 0  }
   0x2   :  { %s668_s22 = smov 0   ;;  %s670_s23 = smov 0  }
   0x3   :  { %s672_s24 = smov 0  }
   0x4 LB: > { %s24_s25 = sadd.s32 1, %s617_s22  ;;  %s27_s26 = sadd.s32 1, %s621_s23  ;;  %s625_s24 = sphi %s672_s24, %s15_s24   ;;  %s621_s23 = sphi %s670_s23, %s787_s23   ;;  %s617_s22 = sphi %s668_s22, %s786_s22   ;;  %s613_s21 = sphi %s666_s21, %s785_s21   ;;  %s609_s20 = sphi %s664_s20, %s784_s20   ;;  %s605_s19 = sphi %s662_s19, %s783_s19   ;;  %s601_s18 = sphi %s660_s18, %s782_s18  }
   0x5   : > { %p25_p0 = scmp.ge.s32.totalorder %s24_s25, 4  ;;  %p43_p1 = scmp.ne.s32.totalorder %s605_s19, %s601_s18 }
   0x6   : > { %p44_p2 = scmp.eq.s32.totalorder %s625_s24, 0  ;;  %s36_s30 = sadd.s32 1, %s605_s19 }
   0x7   : > { %s789_s25 = smov (%p25_p0, %s24_s25), 0  ;;  %s791_s26 = smov (!%p25_p0, %s27_s26), %s621_s23 }
   0x8   : > { %p45_p3 = por %p44_p2, %p43_p1  ;;  %p29_p4 = scmp.ge.s32.totalorder %s791_s26, 2 }
   0x9   : > { %s31_s27 = ssub.s32 %s617_s22, %s789_s25  ;;  %p487_p6 = scmp.ge.s32.totalorder %s625_s24, 8 }
   0xa   : > { %s793_s26 = smov (%p29_p4, %s791_s26), 0 }
   0xb   : > { %s32_s28 = ssub.s32 %s621_s23, %s793_s26  ;;  %195 = sbr.rel (%p487_p6) target bundleno = 26 (0x1a), region = 28 }
   0xc   : > { %s33_s29 = sor.u32 %s32_s28, %s31_s27 }
   0xd   : > { %p34_p5 = scmp.eq.s32.totalorder %s33_s29, 0 }
   0xf   : > { %s711_s6 = scalar_select %p34_p5, %s605_s19, %s36_s30  }
  0x10   : > { %198 = sbr.rel (!%p45_p3) target bundleno = 26 (0x1a), region = 32  ;;  %s200_s7 = sand.u32 (%p45_p3), 1, %s605_s19  }
  0x11   : > { %s489_s8 = sshll.u32 (%p45_p3), %s617_s22, 3  ;;  %s488_s9 = sshll.u32 (%p45_p3), %s200_s7, 4 }
  0x12   : > { %s204_s10 = sadd.s32 (%p45_p3), %s621_s23, %s489_s8  ;;  %s202_s15 = scalar_lea.vmem (%p45_p3), [#allocation3], %s488_s9 }
  0x13   : > { %s490_s11 = sshll.u32 (%p45_p3), %s204_s10, 2 }
  0x14   : > { %s206_s14 = scalar_lea.vmem (%p45_p3), %s776_s0, %s490_s11 }
  0x15   : > { %v223_v0 = vld [vmem:[%s206_s14] sm:$0xf]  ;;  %v225_v1 = vld [vmem:[%s206_s14 + $0x8] sm:$0xf]  ;;  %v227_v2 = vld [vmem:[%s206_s14 + $0x10] sm:$0xf] }
  0x16   : > { %224 = vst [vmem:[%s202_s15] sm:$0xf] %v223_v0  ;;  %v229_v3 = vld [vmem:[%s206_s14 + $0x18] sm:$0xf] }
  0x17   : > { %226 = vst [vmem:[%s202_s15 + $0x4] sm:$0xf] %v225_v1 }
  0x18   : > { %228 = vst [vmem:[%s202_s15 + $0x8] sm:$0xf] %v227_v2 }
  0x19   : > { %230 = vst [vmem:[%s202_s15 + $0xc] sm:$0xf] %v229_v3 }
  0x1a PF: > { %p491_p7 = scmp.ge.s32.totalorder %s625_s24, 1  ;;  %p267_p8 = scmp.lt.s32.totalorder %s625_s24, 9 }
  0x1c   : > { %p268_p9 = pnand %p491_p7, %p267_p8 }
  0x1d   : > { %s274_s16 = sand.u32 (!%p268_p9), 1, %s601_s18   ;;  %p307_p10 = scmp.lt.s32.totalorder (!%p268_p9), %s613_s21, 1 }
  0x1e   : > { %271 = sbr.rel (%p268_p9) target bundleno = 192 (0xc0), region = 77  ;;  %s492_s17 = sshll.u32 (!%p268_p9), %s274_s16, 4 }
  0x1f   : > { %p310_p11 = scmp.lt.s32.totalorder (!%p268_p9), %s609_s20, 3  ;;  %s276_s18 = scalar_lea.vmem (!%p268_p9), [#allocation3], %s492_s17 }
  0x20   : > { %p495_p12 = scmp.ne.s32.totalorder (!%p268_p9), %s609_s20, 0 }
  0x23   : > { %s795_s21 = smov (!%p307_p10, %s613_s21), 1 }
  0x24   : > { %s311_s27 = scalar_select %p310_p11, %s609_s20, 3 }
  0x25   : > { %s309_s30 = scalar_lea.vmem %s780_s4, %s795_s21  ;;  %322 = sbr.rel (%p495_p12) target bundleno = 44 (0x2c), region = 85 }
  0x26   : > { %s493_s7 = sshll.u32 %s311_s27, 1 }
  0x27   : > { %s315_s8 = sadd.s32 %s493_s7, %s795_s21 }
  0x28   : > { %s494_s9 = sshll.u32 %s315_s8, 2 }
  0x29   : > { %s737_s12 = scalar_lea.vmem %s781_s5, %s494_s9 }
  0x2a   : > { %v627_v4 = vmov 0.0  }
  0x2b   : > { %323 = vst [vmem:[#allocation2] sm:$0xff] %v627_v4 }
  0x2c PF: > { %v509_v5 = vld [vmem:[%s276_s18 + $0x8] sm:$0xff]  ;;  %v628_v7 = vmov 0   ;;  %v508_v8 = vld [vmem:[%s276_s18] sm:$0xff]  ;;  %vm341_vm0 = vcmask 261120   ;;  %v629_v19 = vmov 0.0  }
  0x2d   : > { %v358_v6 = vld [vmem:[%s778_s2] sm:$0xff]  ;;  %569 = vset.pattern.permute.xlu0 %v628_v7  ;;  %351 = vmatpush.bf16.msra.mxu0 %v509_v5 }
  0x2e   : > { %361 = vperm.xlu0 %569, %v358_v6   ;;  %v324_v9 = vld [vmem:[%s777_s1] sm:$0xf] }
  0x2f   : > { %v365_v10 = vld [vmem:[%s779_s3] sm:$0xff] }
  0x30   : > { %v570_v18 = vld [vmem:[%s309_s30] ss:$0 sm:$0xff] }
  0x31   : > { %352 = vmatpush.bf16.msra.mxu0 %v508_v8 }
  0x32   : > { %v372_v15 = vld [vmem:[#allocation2] sm:$0xff] }
  0x34   : > { %504 = vmatmul.msk.bf16.vlgmr.msra.gmra.mxu0 %vm341_vm0, %v324_v9 }
  0x36   : > { %368 = vperm.xlu0 %569, %v365_v10  }
  0xa0   : > { %v362_v11 = vpop.permute.xlu0 %361 }
  0xa8   : > { %v369_v14 = vpop.permute.xlu0 %368 }
  0xb1   : > { %v354_v12 = vpop.f32.mrf.mxu0 }
  0xb2   : > { %v364_v13 = vmul.f32 %v362_v11, %v354_v12 }
  0xb4   : > { %v371_v16 = vadd.f32 %v369_v14, %v364_v13 }
  0xb6   : > { %v373_v17 = vadd.f32 %v372_v15, %v371_v16 }
  0xb8   : > { %vm374_vm1 = vcmp.ge.f32.partialorder %v373_v17, 1.0 }
  0xb9   : > { %v505_v20 = vsel %vm374_vm1, 1.0, %v629_v19  ;;  %v356_v21 = vpop.f32.mrf.mxu0 }
  0xba   : > { %v377_v22 = vsub.f32 1.0, %v505_v20  ;;  %v384_v23 = vmul.f32 %v570_v18, %v505_v20 }
  0xbc   : > { %v378_v24 = vmul.f32 %v377_v22, %v373_v17  ;;  %v385_v25 = vpack.c.bf16 %v384_v23, %v384_v23 }
  0xbe   : > { %379 = vst [vmem:[#allocation2] sm:$0xff] %v378_v24 }
  0xbf   : > { %386 = vst [vmem:[%s737_s12] sm:$0xf] %v385_v25 }
  0xc0 PF: > { %s15_s24 = sadd.s32 1, %s625_s24   ;;  %s782_s18 = smov %s605_s19 }
  0xc1   : > { %p12_p13 = scmp.ge.s32.totalorder %s15_s24, 10   ;;  %s783_s19 = smov %s711_s6 }
  0xc2   : > { %s784_s20 = smov %s617_s22  ;;  %s785_s21 = smov %s621_s23 }
  0xc3   : > { %s786_s22 = smov %s789_s25  ;;  %s787_s23 = smov %s793_s26 }
  0xc4   :  { %14 = sbr.rel (!%p12_p13) target bundleno = 4 (0x4), region = 123 }

</bundles_post_ra>
